<compile_context>
chip_gen: v7x
topology: tpu7x:2x2x1
jax: 0.10.0
libtpu: 0.0.40
codegen_flags: <defaults>
</compile_context>

<pallas_src>
import functools

import jax
import jax.numpy as jnp
from jax.experimental import pallas as pl
from jax.experimental.pallas import tpu as pltpu


def mlp1_kernel(x_ref,
                w1_ref, b1_ref,
                w2_ref, b2_ref,
                w3_ref, b3_ref,
                w4_ref, b4_ref,
                w5_ref, b5_ref,
                o_ref,
                *, reduce_final):
    # One (TB, D) batch tile. MXU inputs are bf16, accumulation is f32; all
    # elementwise math (bias add, ReLU, sigmoid) stays f32.
    h = x_ref[...].astype(jnp.bfloat16)

    h = jnp.dot(h, w1_ref[...], preferred_element_type=jnp.float32) + b1_ref[...]
    h = jnp.maximum(h, 0.0).astype(jnp.bfloat16)

    h = jnp.dot(h, w2_ref[...], preferred_element_type=jnp.float32) + b2_ref[...]
    h = jnp.maximum(h, 0.0).astype(jnp.bfloat16)

    h = jnp.dot(h, w3_ref[...], preferred_element_type=jnp.float32) + b3_ref[...]
    h = jnp.maximum(h, 0.0).astype(jnp.bfloat16)

    h = jnp.dot(h, w4_ref[...], preferred_element_type=jnp.float32) + b4_ref[...]
    h = jnp.maximum(h, 0.0)                       # (TB, D//2) f32

    if reduce_final:
        # num_classes == 1: an N=1 matmul would waste the MXU and force a
        # masked lane-width-1 store.  Do a VPU multiply + lane reduce instead.
        z = jnp.sum(h * w5_ref[...], axis=-1, keepdims=True) + b5_ref[...]
    else:
        z = jnp.dot(h.astype(jnp.bfloat16), w5_ref[...],
                    preferred_element_type=jnp.float32) + b5_ref[...]

    # sigmoid(z) = 1 / (1 + exp(-z)); exp and the approximate reciprocal both
    # run on the EUP slot (essentially free next to the VPU/MXU work).
    p = pl.reciprocal(1.0 + jnp.exp(-z), approx=True)

    # Lane-dense store: broadcast across the 128-wide padded output slab so
    # the store is an unmasked vst; the wrapper slices the real columns out.
    o_ref[...] = jnp.broadcast_to(p, o_ref.shape).astype(o_ref.dtype)


def prepare_params(params, num_classes=1):
    """One-time layout conversion (hoisted out of the hot path):
    PyTorch (W:(out,in), b:(out,)) -> kernel layout.
    Hidden-layer weights become (in, out) bf16 for the MXU; biases (1, out) f32.
    The final layer:
      * num_classes == 1 -> (1, D/2) f32 row, consumed by the in-kernel reduce,
      * num_classes  > 1 -> (D/2, OUT_PAD) bf16, zero-padded to a lane-dense
        multiple of 128 columns (padding is sliced off after the kernel).
    """
    flat = []
    n = len(params)
    for i, (W, b) in enumerate(params):
        W = jnp.asarray(W, jnp.float32)
        b = jnp.asarray(b, jnp.float32)
        if i < n - 1:
            flat.append(W.T.astype(jnp.bfloat16))   # (in, out) bf16 for the MXU
            flat.append(b[None, :])                 # (1, out) f32 for the VPU
        elif num_classes == 1:
            flat.append(W)                          # (1, D/2) f32 row
            flat.append(b[None, :])                 # (1, 1) f32
        else:
            out_pad = 128 * pl.cdiv(num_classes, 128)
            Wt = jnp.pad(W.T, ((0, 0), (0, out_pad - num_classes)))
            flat.append(Wt.astype(jnp.bfloat16))    # (D/2, OUT_PAD)
            flat.append(jnp.pad(b, (0, out_pad - num_classes))[None, :])
    return tuple(flat)


def mlp1_forward(x, flat_params, *, num_classes=1, tb=128):
    """x: (B, D) f32.  flat_params: output of prepare_params.
    Returns (B, num_classes) f32."""
    B, D = x.shape
    out_pad = 128 * pl.cdiv(num_classes, 128)       # lane-dense output slab

    # Batch tile: multiple of 8 (sublane), capped at the (padded) batch.
    TB = min(tb, pl.cdiv(B, 8) * 8)
    B_pad = pl.cdiv(B, TB) * TB
    if B_pad != B:
        x = jnp.pad(x, ((0, B_pad - B), (0, 0)))

    grid = (B_pad // TB,)

    # x / out tiles move with the grid; weights & biases have a constant
    # index_map so they stay VMEM-resident (no re-DMA across grid steps).
    in_specs = [pl.BlockSpec((TB, D), lambda i: (i, 0))]
    in_specs += [pl.BlockSpec(p.shape, lambda i: (0, 0)) for p in flat_params]
    out_specs = pl.BlockSpec((TB, out_pad), lambda i: (i, 0))

    # VMEM budgeting: only raise the scoped limit when resident weights need
    # it; cap at 64 MiB so the same plan still fits a v7x TensorCore.
    weight_bytes = sum(int(p.size) * p.dtype.itemsize for p in flat_params)
    tile_bytes = 2 * (TB * D * 4 + TB * out_pad * 4)      # double-buffered tiles
    need = 2 * weight_bytes + tile_bytes + (4 << 20)
    vmem_limit = min(need, 64 << 20) if need > (16 << 20) else None

    out = pl.pallas_call(
        functools.partial(mlp1_kernel, reduce_final=(num_classes == 1)),
        out_shape=jax.ShapeDtypeStruct((B_pad, out_pad), jnp.float32),
        grid=grid,
        in_specs=in_specs,
        out_specs=out_specs,
        compiler_params=pltpu.CompilerParams(
            dimension_semantics=("parallel",),   # v7x: shard batch tiles over both TCs
            vmem_limit_bytes=vmem_limit),
    )(x, *flat_params)

    return out[:B, :num_classes]


def init_params(key, input_size, num_classes=1):
    """Deterministic init matching MLP_1.__init__ layer shapes
    (PyTorch convention: W is (out_features, in_features))."""
    dims = [
        (input_size, input_size),
        (input_size, input_size),
        (input_size, input_size),
        (input_size // 2, input_size),
        (num_classes, input_size // 2),
    ]
    params = []
    for out_f, in_f in dims:
        key, kw, kb = jax.random.split(key, 3)
        bound = 1.0 / jnp.sqrt(in_f)
        W = jax.random.uniform(kw, (out_f, in_f), jnp.float32, -bound, bound)
        b = jax.random.uniform(kb, (out_f,), jnp.float32, -bound, bound)
        params.append((W, b))
    return params


def reference_forward(x, params, num_classes=1):
    # Pure-JAX reference mirroring the kernel's numerics
    # (bf16 MXU inputs, f32 accumulation, f32 elementwise).
    h = x
    n = len(params)
    for i, (W, b) in enumerate(params):
        if i < n - 1:
            h = jnp.dot(h.astype(jnp.bfloat16), W.T.astype(jnp.bfloat16),
                        preferred_element_type=jnp.float32) + b
            h = jnp.maximum(h, 0.0)
        elif num_classes == 1:
            h = jnp.sum(h * W[0][None, :], axis=-1, keepdims=True) + b
        else:
            h = jnp.dot(h.astype(jnp.bfloat16), W.T.astype(jnp.bfloat16),
                        preferred_element_type=jnp.float32) + b
    return 1.0 / (1.0 + jnp.exp(-h))


if __name__ == "__main__":
    key = jax.random.PRNGKey(0)
    B, D, NC = 256, 32, 1   # batch tiled into 128-row grid steps; D must be even

    key, kx = jax.random.split(key)
    x = jax.random.normal(kx, (B, D), jnp.float32)
    params = init_params(key, D, num_classes=NC)

    flat = prepare_params(params, num_classes=NC)   # one-time layout conversion
    fwd = jax.jit(functools.partial(mlp1_forward, num_classes=NC, tb=128))

    out = jax.block_until_ready(fwd(x, flat))
    ref = reference_forward(x, params, num_classes=NC)

    assert out.shape == (B, NC), out.shape
    err = jnp.max(jnp.abs(out - ref))
    assert err < 5e-3, f"mismatch: max abs err {err}"

    print("KERNEL_OK")
</pallas_src>

<mosaic_0001>
module attributes {stable_mosaic.version = 11 : i64} {
  func.func @mlp1_kernel(%arg0: i32, %arg1: memref<128x32xf32, #tpu.memory_space<vmem>>, %arg2: memref<32x32xbf16, #tpu.memory_space<vmem>>, %arg3: memref<1x32xf32, #tpu.memory_space<vmem>>, %arg4: memref<32x32xbf16, #tpu.memory_space<vmem>>, %arg5: memref<1x32xf32, #tpu.memory_space<vmem>>, %arg6: memref<32x32xbf16, #tpu.memory_space<vmem>>, %arg7: memref<1x32xf32, #tpu.memory_space<vmem>>, %arg8: memref<32x16xbf16, #tpu.memory_space<vmem>>, %arg9: memref<1x16xf32, #tpu.memory_space<vmem>>, %arg10: memref<1x16xf32, #tpu.memory_space<vmem>>, %arg11: memref<1x1xf32, #tpu.memory_space<vmem>>, %arg12: memref<128x128xf32, #tpu.memory_space<vmem>>) attributes {dimension_semantics = [#tpu.dimension_semantics<parallel>], iteration_bounds = array<i64: 2>, scalar_prefetch = 0 : i64, scratch_operands = 0 : i64, tpu.core_type = #tpu.core_type<tc>, window_params = [{transform_indices = @transform_0, window_bounds = array<i64: 128, 32>}, {pipeline_mode = #tpu.pipeline_mode<synchronous>, transform_indices = @transform_1, window_bounds = array<i64: 32, 32>}, {pipeline_mode = #tpu.pipeline_mode<synchronous>, transform_indices = @transform_2, window_bounds = array<i64: 1, 32>}, {pipeline_mode = #tpu.pipeline_mode<synchronous>, transform_indices = @transform_3, window_bounds = array<i64: 32, 32>}, {pipeline_mode = #tpu.pipeline_mode<synchronous>, transform_indices = @transform_4, window_bounds = array<i64: 1, 32>}, {pipeline_mode = #tpu.pipeline_mode<synchronous>, transform_indices = @transform_5, window_bounds = array<i64: 32, 32>}, {pipeline_mode = #tpu.pipeline_mode<synchronous>, transform_indices = @transform_6, window_bounds = array<i64: 1, 32>}, {pipeline_mode = #tpu.pipeline_mode<synchronous>, transform_indices = @transform_7, window_bounds = array<i64: 32, 16>}, {pipeline_mode = #tpu.pipeline_mode<synchronous>, transform_indices = @transform_8, window_bounds = array<i64: 1, 16>}, {pipeline_mode = #tpu.pipeline_mode<synchronous>, transform_indices = @transform_9, window_bounds = array<i64: 1, 16>}, {pipeline_mode = #tpu.pipeline_mode<synchronous>, transform_indices = @transform_10, window_bounds = array<i64: 1, 1>}, {transform_indices = @transform_11, window_bounds = array<i64: 128, 128>}]} {
    %c0 = arith.constant 0 : index
    %c0_0 = arith.constant 0 : index
    %0 = vector.load %arg1[%c0, %c0_0] : memref<128x32xf32, #tpu.memory_space<vmem>>, vector<128x32xf32>
    %1 = arith.truncf %0 : vector<128x32xf32> to vector<128x32xbf16>
    %c0_1 = arith.constant 0 : index
    %c0_2 = arith.constant 0 : index
    %2 = vector.load %arg2[%c0_1, %c0_2] : memref<32x32xbf16, #tpu.memory_space<vmem>>, vector<32x32xbf16>
    %cst = arith.constant dense<0.000000e+00> : vector<128x32xf32>
    %3 = tpu.matmul %1, %2, %cst {dimension_numbers = #tpu.dot_dimension_numbers<[1], [0], [0], [1], [0, 0, 1, 1], [], []>} : vector<128x32xbf16>, vector<32x32xbf16>, vector<128x32xf32> -> vector<128x32xf32>
    %c0_3 = arith.constant 0 : index
    %c0_4 = arith.constant 0 : index
    %4 = vector.load %arg3[%c0_3, %c0_4] : memref<1x32xf32, #tpu.memory_space<vmem>>, vector<1x32xf32>
    %5 = vector.broadcast %4 : vector<1x32xf32> to vector<128x32xf32>
    %6 = arith.addf %3, %5 : vector<128x32xf32>
    %cst_5 = arith.constant 0.000000e+00 : f32
    %7 = vector.broadcast %cst_5 : f32 to vector<128x32xf32>
    %8 = arith.maximumf %6, %7 : vector<128x32xf32>
    %9 = arith.truncf %8 : vector<128x32xf32> to vector<128x32xbf16>
    %c0_6 = arith.constant 0 : index
    %c0_7 = arith.constant 0 : index
    %10 = vector.load %arg4[%c0_6, %c0_7] : memref<32x32xbf16, #tpu.memory_space<vmem>>, vector<32x32xbf16>
    %cst_8 = arith.constant dense<0.000000e+00> : vector<128x32xf32>
    %11 = tpu.matmul %9, %10, %cst_8 {dimension_numbers = #tpu.dot_dimension_numbers<[1], [0], [0], [1], [0, 0, 1, 1], [], []>} : vector<128x32xbf16>, vector<32x32xbf16>, vector<128x32xf32> -> vector<128x32xf32>
    %c0_9 = arith.constant 0 : index
    %c0_10 = arith.constant 0 : index
    %12 = vector.load %arg5[%c0_9, %c0_10] : memref<1x32xf32, #tpu.memory_space<vmem>>, vector<1x32xf32>
    %13 = vector.broadcast %12 : vector<1x32xf32> to vector<128x32xf32>
    %14 = arith.addf %11, %13 : vector<128x32xf32>
    %cst_11 = arith.constant 0.000000e+00 : f32
    %15 = vector.broadcast %cst_11 : f32 to vector<128x32xf32>
    %16 = arith.maximumf %14, %15 : vector<128x32xf32>
    %17 = arith.truncf %16 : vector<128x32xf32> to vector<128x32xbf16>
    %c0_12 = arith.constant 0 : index
    %c0_13 = arith.constant 0 : index
    %18 = vector.load %arg6[%c0_12, %c0_13] : memref<32x32xbf16, #tpu.memory_space<vmem>>, vector<32x32xbf16>
    %cst_14 = arith.constant dense<0.000000e+00> : vector<128x32xf32>
    %19 = tpu.matmul %17, %18, %cst_14 {dimension_numbers = #tpu.dot_dimension_numbers<[1], [0], [0], [1], [0, 0, 1, 1], [], []>} : vector<128x32xbf16>, vector<32x32xbf16>, vector<128x32xf32> -> vector<128x32xf32>
    %c0_15 = arith.constant 0 : index
    %c0_16 = arith.constant 0 : index
    %20 = vector.load %arg7[%c0_15, %c0_16] : memref<1x32xf32, #tpu.memory_space<vmem>>, vector<1x32xf32>
    %21 = vector.broadcast %20 : vector<1x32xf32> to vector<128x32xf32>
    %22 = arith.addf %19, %21 : vector<128x32xf32>
    %cst_17 = arith.constant 0.000000e+00 : f32
    %23 = vector.broadcast %cst_17 : f32 to vector<128x32xf32>
    %24 = arith.maximumf %22, %23 : vector<128x32xf32>
    %25 = arith.truncf %24 : vector<128x32xf32> to vector<128x32xbf16>
    %c0_18 = arith.constant 0 : index
    %c0_19 = arith.constant 0 : index
    %26 = vector.load %arg8[%c0_18, %c0_19] : memref<32x16xbf16, #tpu.memory_space<vmem>>, vector<32x16xbf16>
    %cst_20 = arith.constant dense<0.000000e+00> : vector<128x16xf32>
    %27 = tpu.matmul %25, %26, %cst_20 {dimension_numbers = #tpu.dot_dimension_numbers<[1], [0], [0], [1], [0, 0, 1, 1], [], []>} : vector<128x32xbf16>, vector<32x16xbf16>, vector<128x16xf32> -> vector<128x16xf32>
    %c0_21 = arith.constant 0 : index
    %c0_22 = arith.constant 0 : index
    %28 = vector.load %arg9[%c0_21, %c0_22] : memref<1x16xf32, #tpu.memory_space<vmem>>, vector<1x16xf32>
    %29 = vector.broadcast %28 : vector<1x16xf32> to vector<128x16xf32>
    %30 = arith.addf %27, %29 : vector<128x16xf32>
    %cst_23 = arith.constant 0.000000e+00 : f32
    %31 = vector.broadcast %cst_23 : f32 to vector<128x16xf32>
    %32 = arith.maximumf %30, %31 : vector<128x16xf32>
    %c0_24 = arith.constant 0 : index
    %c0_25 = arith.constant 0 : index
    %33 = vector.load %arg10[%c0_24, %c0_25] : memref<1x16xf32, #tpu.memory_space<vmem>>, vector<1x16xf32>
    %34 = vector.broadcast %33 : vector<1x16xf32> to vector<128x16xf32>
    %35 = arith.mulf %32, %34 : vector<128x16xf32>
    %cst_26 = arith.constant dense<0.000000e+00> : vector<128xf32>
    %36 = vector.multi_reduction <add>, %35, %cst_26 [1] : vector<128x16xf32> to vector<128xf32>
    %37 = vector.shape_cast %36 : vector<128xf32> to vector<128x1xf32>
    %c0_27 = arith.constant 0 : index
    %c0_28 = arith.constant 0 : index
    %38 = vector.load %arg11[%c0_27, %c0_28] : memref<1x1xf32, #tpu.memory_space<vmem>>, vector<1x1xf32>
    %39 = vector.broadcast %38 : vector<1x1xf32> to vector<128x1xf32>
    %40 = arith.addf %37, %39 : vector<128x1xf32>
    %cst_29 = arith.constant 0.000000e+00 : f32
    %41 = vector.broadcast %cst_29 : f32 to vector<128x1xf32>
    %42 = arith.subf %41, %40 : vector<128x1xf32>
    %43 = math.exp %42 : vector<128x1xf32>
    %cst_30 = arith.constant 1.000000e+00 : f32
    %44 = vector.broadcast %cst_30 : f32 to vector<128x1xf32>
    %45 = arith.addf %44, %43 : vector<128x1xf32>
    %46 = tpu.reciprocal %45 {approx = true} : vector<128x1xf32> -> vector<128x1xf32>
    %47 = vector.shape_cast %46 : vector<128x1xf32> to vector<128x1xf32>
    %48 = vector.broadcast %47 : vector<128x1xf32> to vector<128x128xf32>
    %c0_31 = arith.constant 0 : index
    %c0_32 = arith.constant 0 : index
    %49 = vector.load %arg12[%c0_31, %c0_32] : memref<128x128xf32, #tpu.memory_space<vmem>>, vector<128x128xf32>
    tpu.vector_store %arg12[%c0_31, %c0_32], %48 {strides = array<i32>} : memref<128x128xf32, #tpu.memory_space<vmem>>, vector<128x128xf32>,
    return
  }
  func.func @transform_0(%arg0: i32) -> (i32, i32) {
    %c0_i32 = arith.constant 0 : i32
    %c0_i32_0 = arith.constant 0 : i32
    return %arg0, %c0_i32 : i32, i32
  }
  func.func @transform_1(%arg0: i32) -> (i32, i32) {
    %c0_i32 = arith.constant 0 : i32
    %c0_i32_0 = arith.constant 0 : i32
    %c0_i32_1 = arith.constant 0 : i32
    return %c0_i32, %c0_i32_0 : i32, i32
  }
  func.func @transform_2(%arg0: i32) -> (i32, i32) {
    %c0_i32 = arith.constant 0 : i32
    %c0_i32_0 = arith.constant 0 : i32
    %c0_i32_1 = arith.constant 0 : i32
    return %c0_i32, %c0_i32_0 : i32, i32
  }
  func.func @transform_3(%arg0: i32) -> (i32, i32) {
    %c0_i32 = arith.constant 0 : i32
    %c0_i32_0 = arith.constant 0 : i32
    %c0_i32_1 = arith.constant 0 : i32
    return %c0_i32, %c0_i32_0 : i32, i32
  }
  func.func @transform_4(%arg0: i32) -> (i32, i32) {
    %c0_i32 = arith.constant 0 : i32
    %c0_i32_0 = arith.constant 0 : i32
    %c0_i32_1 = arith.constant 0 : i32
    return %c0_i32, %c0_i32_0 : i32, i32
  }
  func.func @transform_5(%arg0: i32) -> (i32, i32) {
    %c0_i32 = arith.constant 0 : i32
    %c0_i32_0 = arith.constant 0 : i32
    %c0_i32_1 = arith.constant 0 : i32
    return %c0_i32, %c0_i32_0 : i32, i32
  }
  func.func @transform_6(%arg0: i32) -> (i32, i32) {
    %c0_i32 = arith.constant 0 : i32
    %c0_i32_0 = arith.constant 0 : i32
    %c0_i32_1 = arith.constant 0 : i32
    return %c0_i32, %c0_i32_0 : i32, i32
  }
  func.func @transform_7(%arg0: i32) -> (i32, i32) {
    %c0_i32 = arith.constant 0 : i32
    %c0_i32_0 = arith.constant 0 : i32
    %c0_i32_1 = arith.constant 0 : i32
    return %c0_i32, %c0_i32_0 : i32, i32
  }
  func.func @transform_8(%arg0: i32) -> (i32, i32) {
    %c0_i32 = arith.constant 0 : i32
    %c0_i32_0 = arith.constant 0 : i32
    %c0_i32_1 = arith.constant 0 : i32
    return %c0_i32, %c0_i32_0 : i32, i32
  }
  func.func @transform_9(%arg0: i32) -> (i32, i32) {
    %c0_i32 = arith.constant 0 : i32
    %c0_i32_0 = arith.constant 0 : i32
    %c0_i32_1 = arith.constant 0 : i32
    return %c0_i32, %c0_i32_0 : i32, i32
  }
  func.func @transform_10(%arg0: i32) -> (i32, i32) {
    %c0_i32 = arith.constant 0 : i32
    %c0_i32_0 = arith.constant 0 : i32
    %c0_i32_1 = arith.constant 0 : i32
    return %c0_i32, %c0_i32_0 : i32, i32
  }
  func.func @transform_11(%arg0: i32) -> (i32, i32) {
    %c0_i32 = arith.constant 0 : i32
    %c0_i32_0 = arith.constant 0 : i32
    return %arg0, %c0_i32 : i32, i32
  }
}

</mosaic_0001>

<bundles_post_ra>
// kernel: mlp1_forward.1
= control target key start
LH: loop header
LB: loop body
LE: loop exit
PB: predicated region body
PF: predicated region fallthrough
CT: control target
= control target key end

     0   :  { %s1741_s19 = smov 0   ;;  %s1942_s0 = inlined_call_operand.vmem [shape: f32[256,32], index: 0, kind: input, shape index: {}]   ;;  %s1943_s1 = inlined_call_operand.vmem [shape: bf16[32,32], index: 1, kind: input, shape index: {}]   ;;  %s1944_s2 = inlined_call_operand.vmem [shape: f32[1,32], index: 2, kind: input, shape index: {}]   ;;  %s1945_s3 = inlined_call_operand.vmem [shape: bf16[32,32], index: 3, kind: input, shape index: {}]   ;;  %s1946_s4 = inlined_call_operand.vmem [shape: f32[1,32], index: 4, kind: input, shape index: {}]   ;;  %s1947_s5 = inlined_call_operand.vmem [shape: bf16[32,32], index: 5, kind: input, shape index: {}]   ;;  %s1948_s6 = inlined_call_operand.vmem [shape: f32[1,32], index: 6, kind: input, shape index: {}]   ;;  %s1949_s7 = inlined_call_operand.vmem [shape: bf16[32,16], index: 7, kind: input, shape index: {}]   ;;  %s1950_s8 = inlined_call_operand.vmem [shape: f32[1,16], index: 8, kind: input, shape index: {}]   ;;  %s1951_s9 = inlined_call_operand.vmem [shape: f32[1,16], index: 9, kind: input, shape index: {}]   ;;  %s1952_s10 = inlined_call_operand.<no memory space> [shape: f32[1,1], index: 10, kind: input, shape index: {}]   ;;  %s1953_s11 = inlined_call_operand.vmem [shape: f32[256,128], index: 11, kind: output, shape index: {}]  }
   0x1   :  { %v16_v0 = vstv %s1952_s10 }
   0x2   :  { %17 = vst [vmem:[#allocation2] sm:$0x1] %v16_v0 }
   0x3 LB: > { %s1409_s20 = sadd.s32 4294967295, %s1675_s19   ;;  %p1413_p0 = scmp.ge.s32.totalorder %s1675_s19, 1  ;;  %s1675_s19 = sphi %s1741_s19, %s23_s19  }
   0x4   : > { %p340_p1 = scmp.lt.s32.totalorder %s1675_s19, 3 }
   0x6   : > { %p341_p2 = pnand %p1413_p0, %p340_p1 }
   0x7   : > { %v1597_v1 = vld [vmem:[%s1943_s1] sm:$0xff] (!%p341_p2)   ;;  %s1414_s10 = sshll.u32 (!%p341_p2), %s1409_s20, 4  ;;  %v1598_v2 = vld [vmem:[%s1943_s1 + $0x8] sm:$0xff] (!%p341_p2)   ;;  %vm440_vm0 = vcmask (!%p341_p2), 261120   ;;  %vm1105_vm1 = vcmask (!%p341_p2), 130048  }
   0x8   : > { %344 = sbr.rel (%p341_p2) target bundleno = 1248 (0x4e0), region = 64  ;;  %p381_p3 = scmp.lt.s32.totalorder (!%p341_p2), %s1414_s10, 31  ;;  %1506 = vmatprep.subr.bf16.mxu0 (!%p341_p2), %v1597_v1  ;;  %v1599_v27 = vld [vmem:[%s1945_s3] sm:$0xff] (!%p341_p2)   ;;  %v1600_v28 = vld [vmem:[%s1945_s3 + $0x8] sm:$0xff] (!%p341_p2)  }
   0x9   : > { %1507 = vmatpush3.bf16.msra.mxu0 (!%p341_p2), %v1597_v1  ;;  %1526 = vmatprep.subr.bf16.mxu1 (!%p341_p2), %v1599_v27  ;;  %v1601_v29 = vld [vmem:[%s1947_s5] sm:$0xff] (!%p341_p2)   ;;  %v1602_v30 = vld [vmem:[%s1947_s5 + $0x8] sm:$0xff] (!%p341_p2)  }
   0xa   : > { %1508 = vmatprep.subr.bf16.mxu0 (!%p341_p2), %v1598_v2  ;;  %1527 = vmatpush3.bf16.msra.mxu1 (!%p341_p2), %v1599_v27  ;;  %v1418_v31 = vld [vmem:[%s1944_s2] ss:$0 sm:$0xff] (!%p341_p2) }
   0xb   : > { %1528 = vmatprep.subr.bf16.mxu1 (!%p341_p2), %v1600_v28 }
   0xd   : > { %1509 = vmatpush3.bf16.msra.mxu0 (!%p341_p2), %v1598_v2 }
   0xe   : > { %1529 = vmatpush3.bf16.msra.mxu1 (!%p341_p2), %v1600_v28  ;;  %1546 = vmatprep.subr.bf16.mxu0 (!%p341_p2), %v1601_v29 }
   0xf   : > { %s1955_s10 = smov (!%p381_p3, %s1414_s10), 31 }
  0x10   : > { %s1415_s25 = sshll.u32 %s1955_s10, 3 }
  0x11   : > { %s1763_s28 = scalar_lea.vmem %s1942_s0, %s1415_s25  ;;  %s1921_s17 = scalar_lea.vmem %s1953_s11, %s1415_s25 }
  0x12   : > { %v393_v3 = vld [vmem:[%s1763_s28] sm:$0xff]  ;;  %v394_v4 = vld [vmem:[%s1763_s28 + $0x8] sm:$0xff]  ;;  %v395_v5 = vld [vmem:[%s1763_s28 + $0x10] sm:$0xff] }
  0x13   : > { %v409_v6 = vpack.c.bf16 %v394_v4, %v393_v3  ;;  %v396_v7 = vld [vmem:[%s1763_s28 + $0x18] sm:$0xff]  ;;  %v397_v8 = vld [vmem:[%s1763_s28 + $0x20] sm:$0xff]  ;;  %v398_v9 = vld [vmem:[%s1763_s28 + $0x28] sm:$0xff] }
  0x14   : > { %v410_v10 = vpack.c.bf16 %v396_v7, %v395_v5  ;;  %v411_v11 = vpack.c.bf16 %v398_v9, %v397_v8  ;;  %v399_v12 = vld [vmem:[%s1763_s28 + $0x30] sm:$0xff]  ;;  %v400_v13 = vld [vmem:[%s1763_s28 + $0x38] sm:$0xff]  ;;  %v401_v14 = vld [vmem:[%s1763_s28 + $0x40] sm:$0xff] }
  0x15   : > { %1510 = vmatprep.mubr.msk.bf16.mxu0 %vm440_vm0, %v409_v6  ;;  %v402_v15 = vld [vmem:[%s1763_s28 + $0x48] sm:$0xff]  ;;  %v412_v16 = vpack.c.bf16 %v400_v13, %v399_v12  ;;  %v403_v18 = vld [vmem:[%s1763_s28 + $0x50] sm:$0xff]  ;;  %v404_v19 = vld [vmem:[%s1763_s28 + $0x58] sm:$0xff] }
  0x16   : > { %1511 = vmatmul.mubr.msk.bf16.vlgmr.msra.gmra.mrb[0].mxu0 %vm440_vm0, %v410_v10  ;;  %v413_v17 = vpack.c.bf16 %v402_v15, %v401_v14  ;;  %v405_v20 = vld [vmem:[%s1763_s28 + $0x60] sm:$0xff]  ;;  %v406_v21 = vld [vmem:[%s1763_s28 + $0x68] sm:$0xff]  ;;  %v414_v22 = vpack.c.bf16 %v404_v19, %v403_v18  ;;  %v407_v24 = vld [vmem:[%s1763_s28 + $0x70] sm:$0xff] }
  0x17   : > { %1514 = vmatprep.mubr.msk.bf16.mxu0 %vm440_vm0, %v411_v11  ;;  %v415_v23 = vpack.c.bf16 %v406_v21, %v405_v20  ;;  %v408_v25 = vld [vmem:[%s1763_s28 + $0x78] sm:$0xff]  ;;  %1547 = vmatpush3.bf16.msra.mxu0 %v1601_v29 }
  0x18   : > { %v416_v26 = vpack.c.bf16 %v408_v25, %v407_v24  ;;  %1548 = vmatprep.subr.bf16.mxu0 %v1602_v30  ;;  %v1603_v24 = vld [vmem:[%s1949_s7] sm:$0xff]   ;;  %v1604_v25 = vld [vmem:[%s1949_s7 + $0x8] sm:$0xff]  }
  0x19   : > { %1566 = vmatprep.subr.bf16.mxu1 %v1603_v24 }
  0x1b   : > { %1549 = vmatpush3.bf16.msra.mxu0 %v1602_v30 }
  0x1e   : > { %1515 = vmatmul.mubr.msk.bf16.gmra.mrb[4].mxu0 %vm440_vm0, %v412_v16 }
  0x1f   : > { %1518 = vmatprep.mubr.msk.bf16.mxu0 %vm440_vm0, %v413_v17 }
  0x26   : > { %1519 = vmatmul.mubr.msk.bf16.gmra.mrb[8].mxu0 %vm440_vm0, %v414_v22 }
  0x27   : > { %1522 = vmatprep.mubr.msk.bf16.mxu0 %vm440_vm0, %v415_v23 }
  0x2e   : > { %1523 = vmatmul.mubr.msk.bf16.gmra.mrb[12].mxu0 %vm440_vm0, %v416_v26  ;;  %v1429_v26 = vld [vmem:[%s1946_s4] ss:$0 sm:$0xff] }
  0xe9   : > { %v1512_v32 = vpop.f32.mrb[0].mxu0 }
  0xea   : > { %v508_v33 = vadd.f32 %v1512_v32, %v1418_v31  ;;  %v499_v34 = vpop.f32.mrb[1].mxu0 }
  0xeb   : > { %v500_v35 = vadd.f32 %v1418_v31, %v499_v34  ;;  %v1513_v36 = vpop.f32.mrb[2].mxu0 }
  0xec   : > { %v511_v37 = vadd.f32 %v1513_v36, %v1418_v31  ;;  %v502_v38 = vpop.f32.mrb[3].mxu0  ;;  %v564_v40 = vmax.f32 %v508_v33, 0.0 }
  0xed   : > { %v503_v39 = vadd.f32 %v1418_v31, %v502_v38  ;;  %v562_v42 = vmax.f32 %v500_v35, 0.0 }
  0xee   : > { %v565_v41 = vmax.f32 %v511_v37, 0.0 }
  0xef   : > { %v563_v43 = vmax.f32 %v503_v39, 0.0 }
  0xf0   : > { %v579_v44 = vpack.c.bf16 %v565_v41, %v564_v40 }
  0xf1   : > { %v1516_v45 = vpop.f32.mrb[4].mxu0  ;;  %v578_v46 = vpack.c.bf16 %v563_v43, %v562_v42 }
  0xf2   : > { %v524_v47 = vadd.f32 %v1516_v45, %v1418_v31  ;;  %v515_v48 = vpop.f32.mrb[5].mxu0 }
  0xf3   : > { %v516_v49 = vadd.f32 %v1418_v31, %v515_v48  ;;  %v1517_v50 = vpop.f32.mrb[6].mxu0  ;;  %1530 = vmatprep.mubr.msk.bf16.mxu1 %vm440_vm0, %v578_v46 }
  0xf4   : > { %v568_v51 = vmax.f32 %v524_v47, 0.0  ;;  %v527_v52 = vadd.f32 %v1517_v50, %v1418_v31  ;;  %v518_v53 = vpop.f32.mrb[7].mxu0  ;;  %1531 = vmatmul.mubr.msk.bf16.vlgmr.msra.gmra.mrb[0].mxu1 %vm440_vm0, %v579_v44 }
  0xf5   : > { %v566_v54 = vmax.f32 %v516_v49, 0.0  ;;  %v519_v55 = vadd.f32 %v1418_v31, %v518_v53  ;;  %1567 = vmatpush3.bf16.msra.mxu1 %v1603_v24 }
  0xf6   : > { %v569_v56 = vmax.f32 %v527_v52, 0.0  ;;  %1568 = vmatprep.subr.bf16.mxu1 %v1604_v25 }
  0xf7   : > { %v567_v57 = vmax.f32 %v519_v55, 0.0 }
  0xf8   : > { %v581_v58 = vpack.c.bf16 %v569_v56, %v568_v51 }
  0xf9   : > { %v580_v59 = vpack.c.bf16 %v567_v57, %v566_v54  ;;  %v1520_v60 = vpop.f32.mrb[8].mxu0  ;;  %1569 = vmatpush3.bf16.msra.mxu1 %v1604_v25 }
  0xfa   : > { %v540_v61 = vadd.f32 %v1520_v60, %v1418_v31  ;;  %v531_v62 = vpop.f32.mrb[9].mxu0 }
  0xfb   : > { %v532_v63 = vadd.f32 %v1418_v31, %v531_v62  ;;  %v1521_v0 = vpop.f32.mrb[10].mxu0  ;;  %1534 = vmatprep.mubr.msk.bf16.mxu1 %vm440_vm0, %v580_v59 }
  0xfc   : > { %v572_v1 = vmax.f32 %v540_v61, 0.0  ;;  %v543_v2 = vadd.f32 %v1521_v0, %v1418_v31  ;;  %v534_v3 = vpop.f32.mrb[11].mxu0  ;;  %1535 = vmatmul.mubr.msk.bf16.gmra.mrb[4].mxu1 %vm440_vm0, %v581_v58 }
  0xfd   : > { %v570_v4 = vmax.f32 %v532_v63, 0.0  ;;  %v535_v5 = vadd.f32 %v1418_v31, %v534_v3 }
  0xfe   : > { %v573_v6 = vmax.f32 %v543_v2, 0.0 }
  0xff   : > { %v571_v7 = vmax.f32 %v535_v5, 0.0 }
 0x100   : > { %v583_v8 = vpack.c.bf16 %v573_v6, %v572_v1 }
 0x101   : > { %v582_v9 = vpack.c.bf16 %v571_v7, %v570_v4  ;;  %v1524_v10 = vpop.f32.mrb[12].mxu0 }
 0x102   : > { %v556_v11 = vadd.f32 %v1524_v10, %v1418_v31  ;;  %v547_v12 = vpop.f32.mrb[13].mxu0 }
 0x103   : > { %v548_v13 = vadd.f32 %v1418_v31, %v547_v12  ;;  %v1525_v14 = vpop.f32.mrb[14].mxu0  ;;  %1538 = vmatprep.mubr.msk.bf16.mxu1 %vm440_vm0, %v582_v9 }
 0x104   : > { %v576_v15 = vmax.f32 %v556_v11, 0.0  ;;  %v559_v16 = vadd.f32 %v1525_v14, %v1418_v31  ;;  %v550_v17 = vpop.f32.mrb[15].mxu0  ;;  %1539 = vmatmul.mubr.msk.bf16.gmra.mrb[8].mxu1 %vm440_vm0, %v583_v8 }
 0x105   : > { %v574_v18 = vmax.f32 %v548_v13, 0.0  ;;  %v551_v19 = vadd.f32 %v1418_v31, %v550_v17 }
 0x106   : > { %v577_v20 = vmax.f32 %v559_v16, 0.0 }
 0x107   : > { %v575_v21 = vmax.f32 %v551_v19, 0.0  ;;  %v1440_v19 = vld [vmem:[%s1948_s6] ss:$0 sm:$0xff] }
 0x108   : > { %v585_v22 = vpack.c.bf16 %v577_v20, %v576_v15 }
 0x109   : > { %v584_v23 = vpack.c.bf16 %v575_v21, %v574_v18 }
 0x10b   : > { %1542 = vmatprep.mubr.msk.bf16.mxu1 %vm440_vm0, %v584_v23 }
 0x10c   : > { %1543 = vmatmul.mubr.msk.bf16.gmra.mrb[12].mxu1 %vm440_vm0, %v585_v22 }
 0x1c7   : > { %v1532_v27 = vpop.f32.mrb[0].mxu1 }
 0x1c8   : > { %v676_v28 = vadd.f32 %v1532_v27, %v1429_v26  ;;  %v667_v29 = vpop.f32.mrb[1].mxu1 }
 0x1c9   : > { %v668_v30 = vadd.f32 %v1429_v26, %v667_v29  ;;  %v1533_v31 = vpop.f32.mrb[2].mxu1 }
 0x1ca   : > { %v679_v32 = vadd.f32 %v1533_v31, %v1429_v26  ;;  %v670_v33 = vpop.f32.mrb[3].mxu1  ;;  %v732_v35 = vmax.f32 %v676_v28, 0.0 }
 0x1cb   : > { %v671_v34 = vadd.f32 %v1429_v26, %v670_v33  ;;  %v730_v37 = vmax.f32 %v668_v30, 0.0 }
 0x1cc   : > { %v733_v36 = vmax.f32 %v679_v32, 0.0 }
 0x1cd   : > { %v731_v38 = vmax.f32 %v671_v34, 0.0 }
 0x1ce   : > { %v747_v39 = vpack.c.bf16 %v733_v36, %v732_v35 }
 0x1cf   : > { %v746_v40 = vpack.c.bf16 %v731_v38, %v730_v37  ;;  %v1536_v41 = vpop.f32.mrb[4].mxu1 }
 0x1d0   : > { %v692_v42 = vadd.f32 %v1536_v41, %v1429_v26  ;;  %v683_v43 = vpop.f32.mrb[5].mxu1 }
 0x1d1   : > { %v684_v44 = vadd.f32 %v1429_v26, %v683_v43  ;;  %v1537_v45 = vpop.f32.mrb[6].mxu1  ;;  %1550 = vmatprep.mubr.msk.bf16.mxu0 %vm440_vm0, %v746_v40 }
 0x1d2   : > { %v695_v46 = vadd.f32 %v1537_v45, %v1429_v26  ;;  %v686_v47 = vpop.f32.mrb[7].mxu1  ;;  %1551 = vmatmul.mubr.msk.bf16.vlgmr.msra.gmra.mrb[16].mxu0 %vm440_vm0, %v747_v39  ;;  %v736_v49 = vmax.f32 %v692_v42, 0.0 }
 0x1d3   : > { %v687_v48 = vadd.f32 %v1429_v26, %v686_v47  ;;  %v734_v51 = vmax.f32 %v684_v44, 0.0 }
 0x1d4   : > { %v737_v50 = vmax.f32 %v695_v46, 0.0 }
 0x1d5   : > { %v735_v52 = vmax.f32 %v687_v48, 0.0 }
 0x1d6   : > { %v749_v53 = vpack.c.bf16 %v737_v50, %v736_v49 }
 0x1d7   : > { %v748_v54 = vpack.c.bf16 %v735_v52, %v734_v51  ;;  %v1540_v55 = vpop.f32.mrb[8].mxu1 }
 0x1d8   : > { %v708_v56 = vadd.f32 %v1540_v55, %v1429_v26  ;;  %v699_v57 = vpop.f32.mrb[9].mxu1 }
 0x1d9   : > { %v700_v58 = vadd.f32 %v1429_v26, %v699_v57  ;;  %v1541_v59 = vpop.f32.mrb[10].mxu1  ;;  %1554 = vmatprep.mubr.msk.bf16.mxu0 %vm440_vm0, %v748_v54 }
 0x1da   : > { %v740_v60 = vmax.f32 %v708_v56, 0.0  ;;  %v711_v61 = vadd.f32 %v1541_v59, %v1429_v26  ;;  %v702_v62 = vpop.f32.mrb[11].mxu1  ;;  %1555 = vmatmul.mubr.msk.bf16.gmra.mrb[20].mxu0 %vm440_vm0, %v749_v53 }
 0x1db   : > { %v738_v63 = vmax.f32 %v700_v58, 0.0  ;;  %v703_v0 = vadd.f32 %v1429_v26, %v702_v62 }
 0x1dc   : > { %v741_v1 = vmax.f32 %v711_v61, 0.0 }
 0x1dd   : > { %v739_v2 = vmax.f32 %v703_v0, 0.0 }
 0x1de   : > { %v751_v3 = vpack.c.bf16 %v741_v1, %v740_v60 }
 0x1df   : > { %v750_v4 = vpack.c.bf16 %v739_v2, %v738_v63  ;;  %v1544_v5 = vpop.f32.mrb[12].mxu1 }
 0x1e0   : > { %v724_v6 = vadd.f32 %v1544_v5, %v1429_v26  ;;  %v715_v7 = vpop.f32.mrb[13].mxu1 }
 0x1e1   : > { %v716_v8 = vadd.f32 %v1429_v26, %v715_v7  ;;  %v1545_v9 = vpop.f32.mrb[14].mxu1  ;;  %1558 = vmatprep.mubr.msk.bf16.mxu0 %vm440_vm0, %v750_v4 }
 0x1e2   : > { %v744_v10 = vmax.f32 %v724_v6, 0.0  ;;  %v727_v11 = vadd.f32 %v1545_v9, %v1429_v26  ;;  %v718_v12 = vpop.f32.mrb[15].mxu1  ;;  %1559 = vmatmul.mubr.msk.bf16.gmra.mrb[24].mxu0 %vm440_vm0, %v751_v3 }
 0x1e3   : > { %v742_v13 = vmax.f32 %v716_v8, 0.0  ;;  %v719_v14 = vadd.f32 %v1429_v26, %v718_v12  ;;  %v1843_v12 = vld [vmem:[%s1950_s8] ss:$0 sm:$0xff] }
 0x1e4   : > { %v745_v15 = vmax.f32 %v727_v11, 0.0 }
 0x1e5   : > { %v743_v16 = vmax.f32 %v719_v14, 0.0 }
 0x1e6   : > { %v753_v17 = vpack.c.bf16 %v745_v15, %v744_v10 }
 0x1e7   : > { %v752_v18 = vpack.c.bf16 %v743_v16, %v742_v13 }
 0x1e9   : > { %1562 = vmatprep.mubr.msk.bf16.mxu0 %vm440_vm0, %v752_v18  ;;  %v1850_v18 = vld [vmem:[%s1951_s9] ss:$0 sm:$0xff] }
 0x1ea   : > { %1563 = vmatmul.mubr.msk.bf16.gmra.mrb[28].mxu0 %vm440_vm0, %v753_v17 }
 0x2a5   : > { %v1552_v20 = vpop.f32.mrb[16].mxu0 }
 0x2a6   : > { %v844_v21 = vadd.f32 %v1552_v20, %v1440_v19  ;;  %v835_v22 = vpop.f32.mrb[17].mxu0 }
 0x2a7   : > { %v836_v23 = vadd.f32 %v1440_v19, %v835_v22  ;;  %v1553_v24 = vpop.f32.mrb[18].mxu0 }
 0x2a8   : > { %v847_v25 = vadd.f32 %v1553_v24, %v1440_v19  ;;  %v838_v27 = vpop.f32.mrb[19].mxu0  ;;  %v900_v28 = vmax.f32 %v844_v21, 0.0 }
 0x2a9   : > { %v839_v26 = vadd.f32 %v1440_v19, %v838_v27  ;;  %v898_v30 = vmax.f32 %v836_v23, 0.0 }
 0x2aa   : > { %v901_v29 = vmax.f32 %v847_v25, 0.0 }
 0x2ab   : > { %v899_v31 = vmax.f32 %v839_v26, 0.0 }
 0x2ac   : > { %v915_v32 = vpack.c.bf16 %v901_v29, %v900_v28 }
 0x2ad   : > { %v914_v33 = vpack.c.bf16 %v899_v31, %v898_v30  ;;  %v1556_v34 = vpop.f32.mrb[20].mxu0 }
 0x2ae   : > { %v860_v35 = vadd.f32 %v1556_v34, %v1440_v19  ;;  %v851_v36 = vpop.f32.mrb[21].mxu0 }
 0x2af   : > { %v852_v37 = vadd.f32 %v1440_v19, %v851_v36  ;;  %v1557_v38 = vpop.f32.mrb[22].mxu0  ;;  %1570 = vmatprep.mubr.msk.bf16.mxu1 %vm440_vm0, %v914_v33 }
 0x2b0   : > { %v863_v39 = vadd.f32 %v1557_v38, %v1440_v19  ;;  %v854_v40 = vpop.f32.mrb[23].mxu0  ;;  %1571 = vmatmul.mubr.msk.bf16.vlgmr.msra.gmra.mrb[16].mxu1 %vm440_vm0, %v915_v32  ;;  %v904_v42 = vmax.f32 %v860_v35, 0.0 }
 0x2b1   : > { %v855_v41 = vadd.f32 %v1440_v19, %v854_v40  ;;  %v902_v44 = vmax.f32 %v852_v37, 0.0 }
 0x2b2   : > { %v905_v43 = vmax.f32 %v863_v39, 0.0 }
 0x2b3   : > { %v903_v45 = vmax.f32 %v855_v41, 0.0 }
 0x2b4   : > { %v917_v46 = vpack.c.bf16 %v905_v43, %v904_v42 }
 0x2b5   : > { %v916_v47 = vpack.c.bf16 %v903_v45, %v902_v44  ;;  %v1560_v48 = vpop.f32.mrb[24].mxu0 }
 0x2b6   : > { %v876_v49 = vadd.f32 %v1560_v48, %v1440_v19  ;;  %v867_v50 = vpop.f32.mrb[25].mxu0 }
 0x2b7   : > { %v868_v51 = vadd.f32 %v1440_v19, %v867_v50  ;;  %v1561_v52 = vpop.f32.mrb[26].mxu0  ;;  %1574 = vmatprep.mubr.msk.bf16.mxu1 %vm440_vm0, %v916_v47 }
 0x2b8   : > { %v908_v53 = vmax.f32 %v876_v49, 0.0  ;;  %v879_v54 = vadd.f32 %v1561_v52, %v1440_v19  ;;  %v870_v55 = vpop.f32.mrb[27].mxu0  ;;  %1575 = vmatmul.mubr.msk.bf16.gmra.mrb[20].mxu1 %vm440_vm0, %v917_v46 }
 0x2b9   : > { %v871_v56 = vadd.f32 %v1440_v19, %v870_v55  ;;  %v906_v58 = vmax.f32 %v868_v51, 0.0 }
 0x2ba   : > { %v909_v57 = vmax.f32 %v879_v54, 0.0 }
 0x2bb   : > { %v907_v59 = vmax.f32 %v871_v56, 0.0 }
 0x2bc   : > { %v919_v60 = vpack.c.bf16 %v909_v57, %v908_v53 }
 0x2bd   : > { %v918_v61 = vpack.c.bf16 %v907_v59, %v906_v58  ;;  %v1564_v62 = vpop.f32.mrb[28].mxu0 }
 0x2be   : > { %v892_v63 = vadd.f32 %v1564_v62, %v1440_v19  ;;  %v883_v0 = vpop.f32.mrb[29].mxu0 }
 0x2bf   : > { %v884_v1 = vadd.f32 %v1440_v19, %v883_v0  ;;  %v1565_v2 = vpop.f32.mrb[30].mxu0  ;;  %1578 = vmatprep.mubr.msk.bf16.mxu1 %vm440_vm0, %v918_v61 }
 0x2c0   : > { %v912_v3 = vmax.f32 %v892_v63, 0.0  ;;  %v895_v4 = vadd.f32 %v1565_v2, %v1440_v19  ;;  %v886_v5 = vpop.f32.mrb[31].mxu0  ;;  %1579 = vmatmul.mubr.msk.bf16.gmra.mrb[24].mxu1 %vm440_vm0, %v919_v60 }
 0x2c1   : > { %v887_v6 = vadd.f32 %v1440_v19, %v886_v5  ;;  %v910_v8 = vmax.f32 %v884_v1, 0.0 }
 0x2c2   : > { %v913_v7 = vmax.f32 %v895_v4, 0.0 }
 0x2c3   : > { %v911_v9 = vmax.f32 %v887_v6, 0.0 }
 0x2c4   : > { %v921_v10 = vpack.c.bf16 %v913_v7, %v912_v3 }
 0x2c5   : > { %v920_v11 = vpack.c.bf16 %v911_v9, %v910_v8 }
 0x2c7   : > { %1582 = vmatprep.mubr.msk.bf16.mxu1 %vm440_vm0, %v920_v11 }
 0x2c8   : > { %1583 = vmatmul.mubr.msk.bf16.gmra.mrb[28].mxu1 %vm440_vm0, %v921_v10 }
 0x383   : > { %v1572_v13 = vpop.f32.mrb[16].mxu1 }
 0x384   : > { %v1012_v14 = vadd.f32 %v1572_v13, %v1843_v12  ;;  %v1003_v15 = vpop.f32.mrb[17].mxu1 }
 0x385   : > { %v1004_v16 = vadd.f32 %v1843_v12, %v1003_v15  ;;  %v1573_v17 = vpop.f32.mrb[18].mxu1 }
 0x386   : > { %v1068_v19 = vmax.f32 %v1012_v14, 0.0  ;;  %v1015_v20 = vadd.f32 %v1573_v17, %v1843_v12  ;;  %v1006_v21 = vpop.f32.mrb[19].mxu1 }
 0x387   : > { %v1066_v22 = vmax.f32 %v1004_v16, 0.0  ;;  %v1007_v23 = vadd.f32 %v1843_v12, %v1006_v21 }
 0x388   : > { %v1069_v24 = vmax.f32 %v1015_v20, 0.0  ;;  %v1091_v25 = vmul.f32 %v1850_v18, %v1068_v19 }
 0x389   : > { %v1067_v27 = vmax.f32 %v1007_v23, 0.0  ;;  %v1089_v26 = vmul.f32 %v1850_v18, %v1066_v22 }
 0x38a   : > { %v1112_v28 = vsel %vm1105_vm1, %v1091_v25, 0.0  ;;  %v1092_v29 = vmul.f32 %v1850_v18, %v1069_v24 }
 0x38b   : > { %1113 = vadd.xlane.f32.xlu1 %v1112_v28  ;;  %v1576_v30 = vpop.f32.mrb[20].mxu1  ;;  %v1106_v31 = vsel %vm1105_vm1, %v1089_v26, 0.0  ;;  %v1090_v32 = vmul.f32 %v1850_v18, %v1067_v27 }
 0x38c   : > { %v1028_v33 = vadd.f32 %v1576_v30, %v1843_v12  ;;  %v1019_v34 = vpop.f32.mrb[21].mxu1  ;;  %1107 = vadd.xlane.f32.xlu0 %v1106_v31  ;;  %v1115_v40 = vsel %vm1105_vm1, %v1092_v29, 0.0  ;;  %v1677_v31 = vmov 0  }
 0x38d   : > { %v1020_v35 = vadd.f32 %v1843_v12, %v1019_v34  ;;  %v1577_v36 = vpop.f32.mrb[22].mxu1  ;;  %v1109_v43 = vsel %vm1105_vm1, %v1090_v32, 0.0  ;;  %1595 = vset.pattern.permute.xlu1 %v1677_v31  ;;  %1596 = vset.pattern.permute.xlu0 %v1677_v31  ;;  %v1898_v32 = vld [vmem:[#allocation2] ss:$0 sm:$0xff] }
 0x38e   : > { %v1072_v37 = vmax.f32 %v1028_v33, 0.0  ;;  %v1031_v38 = vadd.f32 %v1577_v36, %v1843_v12  ;;  %v1022_v39 = vpop.f32.mrb[23].mxu1 }
 0x38f   : > { %v1070_v41 = vmax.f32 %v1020_v35, 0.0  ;;  %v1023_v42 = vadd.f32 %v1843_v12, %v1022_v39  ;;  %1116 = vadd.xlane.f32.xlu1 %v1115_v40 }
 0x390   : > { %v1073_v44 = vmax.f32 %v1031_v38, 0.0  ;;  %1110 = vadd.xlane.f32.xlu0 %v1109_v43  ;;  %v1095_v45 = vmul.f32 %v1850_v18, %v1072_v37 }
 0x391   : > { %v1071_v46 = vmax.f32 %v1023_v42, 0.0  ;;  %v1093_v50 = vmul.f32 %v1850_v18, %v1070_v41 }
 0x392   : > { %v1124_v47 = vsel %vm1105_vm1, %v1095_v45, 0.0  ;;  %v1096_v48 = vmul.f32 %v1850_v18, %v1073_v44 }
 0x393   : > { %v1580_v49 = vpop.f32.mrb[24].mxu1  ;;  %v1094_v54 = vmul.f32 %v1850_v18, %v1071_v46  ;;  %v1118_v62 = vsel %vm1105_vm1, %v1093_v50, 0.0 }
 0x394   : > { %v1044_v51 = vadd.f32 %v1580_v49, %v1843_v12  ;;  %v1035_v52 = vpop.f32.mrb[25].mxu1  ;;  %1125 = vadd.xlane.f32.xlu0 %v1124_v47  ;;  %v1127_v53 = vsel %vm1105_vm1, %v1096_v48, 0.0 }
 0x395   : > { %v1036_v55 = vadd.f32 %v1843_v12, %v1035_v52  ;;  %1128 = vadd.xlane.f32.xlu1 %v1127_v53  ;;  %v1581_v56 = vpop.f32.mrb[26].mxu1  ;;  %v1121_v0 = vsel %vm1105_vm1, %v1094_v54, 0.0 }
 0x396   : > { %v1076_v57 = vmax.f32 %v1044_v51, 0.0  ;;  %v1047_v58 = vadd.f32 %v1581_v56, %v1843_v12  ;;  %v1038_v59 = vpop.f32.mrb[27].mxu1 }
 0x397   : > { %v1074_v60 = vmax.f32 %v1036_v55, 0.0  ;;  %v1039_v61 = vadd.f32 %v1843_v12, %v1038_v59 }
 0x398   : > { %v1077_v63 = vmax.f32 %v1047_v58, 0.0  ;;  %1119 = vadd.xlane.f32.xlu0 %v1118_v62  ;;  %v1099_v1 = vmul.f32 %v1850_v18, %v1076_v57 }
 0x399   : > { %v1075_v2 = vmax.f32 %v1039_v61, 0.0  ;;  %1122 = vadd.xlane.f32.xlu1 %v1121_v0  ;;  %v1097_v6 = vmul.f32 %v1850_v18, %v1074_v60 }
 0x39a   : > { %v1136_v3 = vsel %vm1105_vm1, %v1099_v1, 0.0  ;;  %v1100_v4 = vmul.f32 %v1850_v18, %v1077_v63 }
 0x39b   : > { %v1584_v5 = vpop.f32.mrb[28].mxu1  ;;  %v1098_v10 = vmul.f32 %v1850_v18, %v1075_v2  ;;  %v1130_v20 = vsel %vm1105_vm1, %v1097_v6, 0.0 }
 0x39c   : > { %v1060_v7 = vadd.f32 %v1584_v5, %v1843_v12  ;;  %v1051_v8 = vpop.f32.mrb[29].mxu1  ;;  %1137 = vadd.xlane.f32.xlu0 %v1136_v3  ;;  %v1139_v9 = vsel %vm1105_vm1, %v1100_v4, 0.0 }
 0x39d   : > { %v1052_v11 = vadd.f32 %v1843_v12, %v1051_v8  ;;  %v1585_v13 = vpop.f32.mrb[30].mxu1  ;;  %1140 = vadd.xlane.f32.xlu1 %v1139_v9  ;;  %v1133_v21 = vsel %vm1105_vm1, %v1098_v10, 0.0 }
 0x39e   : > { %v1063_v14 = vadd.f32 %v1585_v13, %v1843_v12  ;;  %v1054_v15 = vpop.f32.mrb[31].mxu1  ;;  %v1080_v16 = vmax.f32 %v1060_v7, 0.0 }
 0x39f   : > { %v1078_v17 = vmax.f32 %v1052_v11, 0.0  ;;  %v1055_v19 = vadd.f32 %v1843_v12, %v1054_v15 }
 0x3a0   : > { %1131 = vadd.xlane.f32.xlu0 %v1130_v20  ;;  %v1081_v22 = vmax.f32 %v1063_v14, 0.0  ;;  %v1103_v26 = vmul.f32 %v1850_v18, %v1080_v16 }
 0x3a1   : > { %v1079_v23 = vmax.f32 %v1055_v19, 0.0  ;;  %1134 = vadd.xlane.f32.xlu1 %v1133_v21  ;;  %v1101_v24 = vmul.f32 %v1850_v18, %v1078_v17 }
 0x3a2   : > { %v1104_v12 = vmul.f32 %v1850_v18, %v1081_v22  ;;  %v1148_v29 = vsel %vm1105_vm1, %v1103_v26, 0.0 }
 0x3a3   : > { %v1142_v25 = vsel %vm1105_vm1, %v1101_v24, 0.0  ;;  %v1102_v27 = vmul.f32 %v1850_v18, %v1079_v23 }
 0x3a4   : > { %1143 = vadd.xlane.f32.xlu0 %v1142_v25  ;;  %v1151_v30 = vsel %vm1105_vm1, %v1104_v12, 0.0 }
 0x3a5   : > { %v1145_v28 = vsel %vm1105_vm1, %v1102_v27, 0.0 }
 0x3a6   : > { %1146 = vadd.xlane.f32.xlu1 %v1145_v28 }
 0x3a8   : > { %1149 = vadd.xlane.f32.xlu0 %v1148_v29 }
 0x3aa   : > { %1152 = vadd.xlane.f32.xlu1 %v1151_v30 }
 0x418   : > { %v1114_v33 = vpop.xlane.xlu1 %1113 }
 0x419   : > { %v1163_v34 = vadd.f32 %v1898_v32, %v1114_v33  ;;  %v1108_v35 = vpop.xlane.xlu0 %1107 }
 0x41a   : > { %v1161_v36 = vadd.f32 %v1898_v32, %v1108_v35 }
 0x41b   : > { %v1179_v37 = vsub.f32 0.0, %v1163_v34 }
 0x41c   : > { %v1177_v18 = vsub.f32 0.0, %v1161_v36  ;;  %v1117_v38 = vpop.xlane.xlu1 %1116 }
 0x41d   : > { %v1197_v39 = vmul.f32 1.442695, %v1179_v37  ;;  %v1164_v40 = vadd.f32 %v1898_v32, %v1117_v38  ;;  %v1111_v41 = vpop.xlane.xlu0 %1110 }
 0x41e   : > { %v1193_v42 = vmul.f32 1.442695, %v1177_v18  ;;  %v1162_v43 = vadd.f32 %v1898_v32, %v1111_v41 }
 0x41f   : > { %1605 = vpow2.f32 %v1197_v39  ;;  %v1180_v44 = vsub.f32 0.0, %v1164_v40 }
 0x420   : > { %1607 = vpow2.f32 %v1193_v42  ;;  %v1178_v45 = vsub.f32 0.0, %v1162_v43 }
 0x421   : > { %v1199_v46 = vmul.f32 1.442695, %v1180_v44  ;;  %v1126_v47 = vpop.xlane.xlu0 %1125 }
 0x422   : > { %v1195_v48 = vmul.f32 1.442695, %v1178_v45  ;;  %v1167_v49 = vadd.f32 %v1898_v32, %v1126_v47  ;;  %v1129_v50 = vpop.xlane.xlu1 %1128 }
 0x423   : > { %1609 = vpow2.f32 %v1199_v46  ;;  %v1168_v51 = vadd.f32 %v1898_v32, %v1129_v50 }
 0x424   : > { %1611 = vpow2.f32 %v1195_v48  ;;  %v1183_v52 = vsub.f32 0.0, %v1167_v49 }
 0x425   : > { %v1184_v53 = vsub.f32 0.0, %v1168_v51  ;;  %v1120_v54 = vpop.xlane.xlu0 %1119 }
 0x426   : > { %v1205_v55 = vmul.f32 1.442695, %v1183_v52  ;;  %v1165_v56 = vadd.f32 %v1898_v32, %v1120_v54  ;;  %v1123_v57 = vpop.xlane.xlu1 %1122 }
 0x427   : > { %v1207_v58 = vmul.f32 1.442695, %v1184_v53  ;;  %v1166_v59 = vadd.f32 %v1898_v32, %v1123_v57 }
 0x428   : > { %1613 = vpow2.f32 %v1205_v55  ;;  %v1181_v60 = vsub.f32 0.0, %v1165_v56 }
 0x429   : > { %v1606_v61 = vpop.eup %1605  ;;  %v1182_v62 = vsub.f32 0.0, %v1166_v59  ;;  %v1138_v63 = vpop.xlane.xlu0 %1137  ;;  %1615 = vpow2.f32 %v1207_v58 }
 0x42a   : > { %v1608_v0 = vpop.eup %1607  ;;  %v1227_v1 = vadd.f32 1.0, %v1606_v61  ;;  %v1201_v2 = vmul.f32 1.442695, %v1181_v60  ;;  %v1171_v3 = vadd.f32 %v1898_v32, %v1138_v63  ;;  %v1141_v4 = vpop.xlane.xlu1 %1140 }
 0x42b   : > { %v1225_v5 = vadd.f32 1.0, %v1608_v0  ;;  %v1172_v6 = vadd.f32 %v1898_v32, %v1141_v4  ;;  %v1203_v8 = vmul.f32 1.442695, %v1182_v62 }
 0x42c   : > { %1617 = vrcp.f32 %v1227_v1  ;;  %v1187_v14 = vsub.f32 0.0, %v1171_v3 }
 0x42d   : > { %v1610_v7 = vpop.eup %1609  ;;  %1619 = vrcp.f32 %v1225_v5  ;;  %v1188_v9 = vsub.f32 0.0, %v1172_v6  ;;  %v1132_v10 = vpop.xlane.xlu0 %1131 }
 0x42e   : > { %v1612_v11 = vpop.eup %1611  ;;  %v1228_v13 = vadd.f32 1.0, %v1610_v7  ;;  %1621 = vpow2.f32 %v1201_v2  ;;  %v1135_v15 = vpop.xlane.xlu1 %1134  ;;  %v1169_v17 = vadd.f32 %v1898_v32, %v1132_v10  ;;  %v1213_v24 = vmul.f32 1.442695, %v1187_v14 }
 0x42f   : > { %v1215_v16 = vmul.f32 1.442695, %v1188_v9  ;;  %v1170_v19 = vadd.f32 %v1898_v32, %v1135_v15  ;;  %v1226_v20 = vadd.f32 1.0, %v1612_v11 }
 0x430   : > { %1623 = vrcp.f32 %v1228_v13  ;;  %v1185_v25 = vsub.f32 0.0, %v1169_v17 }
 0x431   : > { %1625 = vpow2.f32 %v1203_v8  ;;  %v1186_v21 = vsub.f32 0.0, %v1170_v19  ;;  %v1144_v22 = vpop.xlane.xlu0 %1143 }
 0x432   : > { %v1614_v23 = vpop.eup %1613  ;;  %1627 = vpow2.f32 %v1215_v16  ;;  %v1173_v26 = vadd.f32 %v1898_v32, %v1144_v22  ;;  %v1209_v36 = vmul.f32 1.442695, %v1185_v25 }
 0x433   : > { %v1211_v27 = vmul.f32 1.442695, %v1186_v21  ;;  %v1147_v28 = vpop.xlane.xlu1 %1146  ;;  %1629 = vrcp.f32 %v1226_v20  ;;  %v1231_v12 = vadd.f32 1.0, %v1614_v23  ;;  %v1616_v30 = vpop.eup %1615 }
 0x434   : > { %v1174_v29 = vadd.f32 %v1898_v32, %v1147_v28  ;;  %1631 = vpow2.f32 %v1213_v24  ;;  %v1189_v37 = vsub.f32 0.0, %v1173_v26  ;;  %v1232_v42 = vadd.f32 1.0, %v1616_v30 }
 0x435   : > { %v1150_v31 = vpop.xlane.xlu0 %1149  ;;  %1633 = vpow2.f32 %v1211_v27 }
 0x436   : > { %v1618_v33 = vpop.eup %1617  ;;  %v1190_v34 = vsub.f32 0.0, %v1174_v29  ;;  %v1175_v18 = vadd.f32 %v1898_v32, %v1150_v31  ;;  %1635 = vrcp.f32 %v1231_v12  ;;  %v1217_v47 = vmul.f32 1.442695, %v1189_v37 }
 0x437   : > { %v1620_v35 = vpop.eup %1619  ;;  %1269 = vperm.xlu1 %1595, %v1618_v33   ;;  %v1153_v38 = vpop.xlane.xlu1 %1152 }
 0x438   : > { %v1622_v39 = vpop.eup %1621  ;;  %v1219_v40 = vmul.f32 1.442695, %v1190_v34  ;;  %v1176_v41 = vadd.f32 %v1898_v32, %v1153_v38  ;;  %1259 = vperm.xlu0 %1596, %v1620_v35   ;;  %v1191_v48 = vsub.f32 0.0, %v1175_v18 }
 0x439   : > { %v1229_v43 = vadd.f32 1.0, %v1622_v39 }
 0x43a   : > { %v1624_v44 = vpop.eup %1623  ;;  %1637 = vpow2.f32 %v1219_v40  ;;  %v1192_v45 = vsub.f32 0.0, %v1176_v41  ;;  %v1221_v32 = vmul.f32 1.442695, %v1191_v48 }
 0x43b   : > { %v1626_v46 = vpop.eup %1625  ;;  %1639 = vpow2.f32 %v1209_v36  ;;  %1274 = vperm.xlu1 %1595, %v1624_v44  }
 0x43c   : > { %1641 = vrcp.f32 %v1229_v43  ;;  %v1223_v49 = vmul.f32 1.442695, %v1192_v45  ;;  %v1628_v50 = vpop.eup %1627  ;;  %v1230_v52 = vadd.f32 1.0, %v1626_v46 }
 0x43d   : > { %1643 = vrcp.f32 %v1232_v42  ;;  %v1630_v51 = vpop.eup %1629  ;;  %v1236_v53 = vadd.f32 1.0, %v1628_v50 }
 0x43e   : > { %1645 = vpow2.f32 %v1223_v49  ;;  %v1632_v54 = vpop.eup %1631 }
 0x43f   : > { %1647 = vpow2.f32 %v1217_v47  ;;  %1264 = vperm.xlu1 %1595, %v1630_v51   ;;  %v1634_v55 = vpop.eup %1633  ;;  %v1235_v59 = vadd.f32 1.0, %v1632_v54 }
 0x440   : > { %1649 = vrcp.f32 %v1236_v53  ;;  %v1636_v56 = vpop.eup %1635  ;;  %v1234_v57 = vadd.f32 1.0, %v1634_v55 }
 0x441   : > { %1651 = vrcp.f32 %v1230_v52 }
 0x442   : > { %1653 = vpow2.f32 %v1221_v32 }
 0x443   : > { %1289 = vperm.xlu1 %1595, %v1636_v56   ;;  %1655 = vrcp.f32 %v1234_v57 }
 0x444   : > { %v1638_v58 = vpop.eup %1637 }
 0x445   : > { %v1640_v60 = vpop.eup %1639  ;;  %v1238_v61 = vadd.f32 1.0, %v1638_v58 }
 0x446   : > { %v1642_v62 = vpop.eup %1641  ;;  %v1233_v1 = vadd.f32 1.0, %v1640_v60 }
 0x447   : > { %v1644_v63 = vpop.eup %1643  ;;  %1657 = vrcp.f32 %v1238_v61  ;;  %1279 = vperm.xlu1 %1595, %v1642_v62  }
 0x448   : > { %v1646_v0 = vpop.eup %1645  ;;  %1659 = vrcp.f32 %v1235_v59 }
 0x449   : > { %v1648_v2 = vpop.eup %1647  ;;  %v1240_v3 = vadd.f32 1.0, %v1646_v0 }
 0x44a   : > { %v1650_v4 = vpop.eup %1649  ;;  %v1237_v6 = vadd.f32 1.0, %v1648_v2 }
 0x44b   : > { %1661 = vrcp.f32 %v1240_v3  ;;  %1314 = vperm.xlu0 %1596, %v1650_v4   ;;  %1294 = vperm.xlu1 %1595, %v1644_v63   ;;  %v1652_v5 = vpop.eup %1651 }
 0x44c   : > { %1663 = vrcp.f32 %v1233_v1  ;;  %v1654_v7 = vpop.eup %1653 }
 0x44d   : > { %v1656_v8 = vpop.eup %1655  ;;  %1665 = vrcp.f32 %v1237_v6  ;;  %v1239_v9 = vadd.f32 1.0, %v1654_v7 }
 0x44f   : > { %1304 = vperm.xlu0 %1596, %v1656_v8   ;;  %1284 = vperm.xlu1 %1595, %v1652_v5   ;;  %1667 = vrcp.f32 %v1239_v9 }
 0x451   : > { %v1658_v10 = vpop.eup %1657 }
 0x452   : > { %v1660_v11 = vpop.eup %1659 }
 0x453   : > { %1324 = vperm.xlu0 %1596, %v1658_v10   ;;  %1309 = vperm.xlu1 %1595, %v1660_v11  }
 0x455   : > { %v1662_v13 = vpop.eup %1661 }
 0x456   : > { %v1664_v14 = vpop.eup %1663 }
 0x457   : > { %1334 = vperm.xlu0 %1596, %v1662_v13   ;;  %1299 = vperm.xlu1 %1595, %v1664_v14   ;;  %v1666_v15 = vpop.eup %1665 }
 0x459   : > { %v1668_v16 = vpop.eup %1667 }
 0x45b   : > { %1319 = vperm.xlu1 %1595, %v1666_v15  }
 0x45f   : > { %1329 = vperm.xlu1 %1595, %v1668_v16  }
 0x4b6   : > { %v1270_v17 = vpop.permute.xlu1 %1269 }
 0x4b7   : > { %1339 = vst [vmem:[%s1921_s17 + $0x10] sm:$0xff] %v1270_v17  ;;  %v1260_v19 = vpop.permute.xlu0 %1259 }
 0x4b8   : > { %1337 = vst [vmem:[%s1921_s17] sm:$0xff] %v1260_v19 }
 0x4ba   : > { %v1275_v20 = vpop.permute.xlu1 %1274 }
 0x4bb   : > { %1340 = vst [vmem:[%s1921_s17 + $0x18] sm:$0xff] %v1275_v20 }
 0x4be   : > { %v1265_v21 = vpop.permute.xlu1 %1264 }
 0x4bf   : > { %1338 = vst [vmem:[%s1921_s17 + $0x8] sm:$0xff] %v1265_v21 }
 0x4c2   : > { %v1290_v22 = vpop.permute.xlu1 %1289 }
 0x4c3   : > { %1343 = vst [vmem:[%s1921_s17 + $0x30] sm:$0xff] %v1290_v22 }
 0x4c6   : > { %v1280_v23 = vpop.permute.xlu1 %1279 }
 0x4c7   : > { %1341 = vst [vmem:[%s1921_s17 + $0x20] sm:$0xff] %v1280_v23 }
 0x4ca   : > { %v1315_v24 = vpop.permute.xlu0 %1314  ;;  %v1295_v25 = vpop.permute.xlu1 %1294 }
 0x4cb   : > { %1348 = vst [vmem:[%s1921_s17 + $0x58] sm:$0xff] %v1315_v24  ;;  %1344 = vst [vmem:[%s1921_s17 + $0x38] sm:$0xff] %v1295_v25 }
 0x4ce   : > { %v1305_v27 = vpop.permute.xlu0 %1304  ;;  %v1285_v26 = vpop.permute.xlu1 %1284 }
 0x4cf   : > { %1346 = vst [vmem:[%s1921_s17 + $0x48] sm:$0xff] %v1305_v27  ;;  %1342 = vst [vmem:[%s1921_s17 + $0x28] sm:$0xff] %v1285_v26 }
 0x4d2   : > { %v1325_v28 = vpop.permute.xlu0 %1324  ;;  %v1310_v12 = vpop.permute.xlu1 %1309 }
 0x4d3   : > { %1350 = vst [vmem:[%s1921_s17 + $0x68] sm:$0xff] %v1325_v28  ;;  %1347 = vst [vmem:[%s1921_s17 + $0x50] sm:$0xff] %v1310_v12 }
 0x4d6   : > { %v1335_v29 = vpop.permute.xlu0 %1334  ;;  %v1300_v30 = vpop.permute.xlu1 %1299 }
 0x4d7   : > { %1352 = vst [vmem:[%s1921_s17 + $0x78] sm:$0xff] %v1335_v29  ;;  %1345 = vst [vmem:[%s1921_s17 + $0x40] sm:$0xff] %v1300_v30 }
 0x4da   : > { %v1320_v31 = vpop.permute.xlu1 %1319 }
 0x4db   : > { %1349 = vst [vmem:[%s1921_s17 + $0x60] sm:$0xff] %v1320_v31 }
 0x4de   : > { %v1330_v33 = vpop.permute.xlu1 %1329 }
 0x4df   : > { %1351 = vst [vmem:[%s1921_s17 + $0x70] sm:$0xff] %v1330_v33 }
 0x4e0 PF: > { %s23_s19 = sadd.s32 1, %s1675_s19  }
 0x4e1   : > { %p20_p4 = scmp.ge.s32.totalorder %s23_s19, 4  }
 0x4e3   :  { %22 = sbr.rel (!%p20_p4) target bundleno = 3 (0x3), region = 94 }

</bundles_post_ra>
